<compile_context>
chip_gen: v7x
topology: tpu7x:2x2x1
jax: 0.10.0
libtpu: 0.0.40
codegen_flags: <defaults>
</compile_context>

<pallas_src>
import jax
import jax.numpy as jnp
import numpy as np
from jax.experimental import pallas as pl
from jax.experimental.pallas import tpu as pltpu

_LANE = 128
_TILE_BYTES = 8 * 1024 * 1024    # ~8 MiB per block (v7x-friendly, fine on v5e/v6e)
_VMEM_LIMIT = 48 * 1024 * 1024   # in+out double-buffered ~32 MiB + headroom


def _identity_kernel(x_ref, o_ref):
    # Pure copy of the current (tile_r, cols) VMEM tile.
    o_ref[...] = x_ref[...]


def _pick_cols(n):
    """Widest lane-dense column count (multiple of 128, <= 4096) dividing n."""
    for c in (4096, 2048, 1024, 512, 256, 128):
        if n % c == 0:
            return c
    return None  # ragged: caller pads to a lane-dense width


def _pick_tile_rows(rows, cols, itemsize, sublane_pack):
    """Largest power-of-two multiple of sublane_pack (packed sublane count)
    whose (tile_r, cols) block stays under the byte cap.  The grid uses cdiv,
    so no exact-divisor requirement; Pallas masks the ragged last block."""
    if rows <= sublane_pack:
        return rows  # block dim == full array dim is always legal
    tile_r = sublane_pack
    while tile_r * 2 <= rows and tile_r * 2 * cols * itemsize <= _TILE_BYTES:
        tile_r *= 2
    return tile_r


def _identity_copy(x):
    """Materialized identity: tiled, lane-dense, double-buffered Pallas copy."""
    orig_shape = x.shape
    dtype = x.dtype
    n = x.size
    if n == 0:
        return x

    itemsize = jnp.dtype(dtype).itemsize
    sublane_pack = max(8, 32 // max(1, itemsize))  # 8 f32 / 16 bf16 / 32 int8

    cols = _pick_cols(n)
    padded = cols is None
    if padded:
        # Ragged element count: pad the flat view up to a lane-dense width and
        # slice back after the copy, instead of one giant serialized block.
        # TODO(synk): for very large ragged tensors, split into a lane-dense
        # bulk region plus a small masked tail instead of padding.
        cols = 512 if n >= 512 else _LANE
        pad = (-n) % cols
        flat = jnp.concatenate([x.reshape(-1), jnp.zeros((pad,), dtype)])
        n_pad = n + pad
    else:
        flat = x.reshape(-1)
        n_pad = n

    rows = n_pad // cols
    x2d = flat.reshape(rows, cols)

    tile_r = _pick_tile_rows(rows, cols, itemsize, sublane_pack)

    # v7x megacore: prefer >= 2 grid steps so the "parallel" axis can shard
    # across both TensorCores (no-op on single-TC v5e/v6e).
    while pl.cdiv(rows, tile_r) < 2 and tile_r > sublane_pack:
        tile_r //= 2

    grid = (pl.cdiv(rows, tile_r),)

    out = pl.pallas_call(
        _identity_kernel,
        out_shape=jax.ShapeDtypeStruct((rows, cols), dtype),
        grid_spec=pltpu.PrefetchScalarGridSpec(
            num_scalar_prefetch=0,
            grid=grid,
            in_specs=[pl.BlockSpec((tile_r, cols), lambda i: (i, 0))],
            out_specs=pl.BlockSpec((tile_r, cols), lambda i: (i, 0)),
        ),
        # Output reuses the (donated) input buffer: zero extra allocation.
        input_output_aliases={0: 0},
        # Pure HBM traffic hint for XLA's scheduler.
        cost_estimate=pl.CostEstimate(
            flops=0, transcendentals=0, bytes_accessed=2 * n_pad * itemsize),
        compiler_params=pltpu.CompilerParams(
            dimension_semantics=("parallel",),
            vmem_limit_bytes=_VMEM_LIMIT,
        ),
    )(x2d)

    if padded:
        out = out.reshape(-1)[:n]
    return out.reshape(orig_shape)


# Donating x lets input_output_aliases={0: 0} genuinely reuse the buffer;
# without donation XLA inserts a defensive copy (an extra full HBM pass).
_identity_copy_jit = jax.jit(_identity_copy, donate_argnums=(0,))


def identity(x, materialize=True):
    """Identity forward pass (y = x).

    materialize=False is the truly optimal path: a metadata-only pass-through.
    materialize=True runs the Pallas copy (donating x so the in/out alias is
    real) for callers that need a freshly materialized buffer.
    """
    if not materialize or x.size == 0:
        return x
    return _identity_copy_jit(x)


if __name__ == "__main__":
    key = jax.random.PRNGKey(0)
    # Small NCHW-style tensor consistent with the module's typical usage.
    x = jax.random.normal(key, (2, 4, 16, 16), dtype=jnp.float32)
    # Keep a host-side reference before x is donated into the kernel.
    x_host = np.asarray(jax.device_get(x))

    y = identity(x)  # runs the Pallas copy; x is donated at the jit boundary
    jax.block_until_ready(y)

    assert y.shape == x_host.shape
    assert y.dtype == x_host.dtype
    assert np.array_equal(np.asarray(jax.device_get(y)), x_host)

    print("KERNEL_OK")
</pallas_src>

<mosaic_0001>
module attributes {stable_mosaic.version = 11 : i64} {
  func.func @_identity_kernel(%arg0: i32, %arg1: memref<1x2048xf32, #tpu.memory_space<vmem>>, %arg2: memref<1x2048xf32, #tpu.memory_space<vmem>>) attributes {dimension_semantics = [#tpu.dimension_semantics<parallel>], iteration_bounds = array<i64: 1>, scalar_prefetch = 0 : i64, scratch_operands = 0 : i64, tpu.core_type = #tpu.core_type<tc>, window_params = [{transform_indices = @transform_0, window_bounds = array<i64: 1, 2048>}, {transform_indices = @transform_1, window_bounds = array<i64: 1, 2048>}]} {
    %c0 = arith.constant 0 : index
    %c0_0 = arith.constant 0 : index
    %0 = vector.load %arg1[%c0, %c0_0] : memref<1x2048xf32, #tpu.memory_space<vmem>>, vector<1x2048xf32>
    %c0_1 = arith.constant 0 : index
    %c0_2 = arith.constant 0 : index
    %1 = vector.load %arg2[%c0_1, %c0_2] : memref<1x2048xf32, #tpu.memory_space<vmem>>, vector<1x2048xf32>
    tpu.vector_store %arg2[%c0_1, %c0_2], %0 {strides = array<i32>} : memref<1x2048xf32, #tpu.memory_space<vmem>>, vector<1x2048xf32>,
    return
  }
  func.func @transform_0(%arg0: i32) -> (i32, i32) {
    %c0_i32 = arith.constant 0 : i32
    %c0_i32_0 = arith.constant 0 : i32
    return %arg0, %c0_i32 : i32, i32
  }
  func.func @transform_1(%arg0: i32) -> (i32, i32) {
    %c0_i32 = arith.constant 0 : i32
    %c0_i32_0 = arith.constant 0 : i32
    return %arg0, %c0_i32 : i32, i32
  }
}

</mosaic_0001>

<bundles_post_ra>
// kernel: _identity_copy.1
= control target key start
LH: loop header
LB: loop body
LE: loop exit
PB: predicated region body
PF: predicated region fallthrough
CT: control target
= control target key end

     0   :  { %s38_s0 = inlined_call_operand.vmem [shape: f32[1,2048], index: 0, kind: input, shape index: {}, may-alias: {0,1}]   ;;  %s39_s1 = inlined_call_operand.vmem [shape: f32[1,2048], index: 1, kind: output, shape index: {}, may-alias: {0,1}]  }
   0x1   :  { %v8_v0 = vld [vmem:[%s38_s0] sm:$0xff]  ;;  %v9_v1 = vld [vmem:[%s38_s0 + $0x8] sm:$0xff] }
   0x2   :  { %10 = vst [vmem:[%s39_s1] sm:$0xff] %v8_v0  ;;  %11 = vst [vmem:[%s39_s1 + $0x8] sm:$0xff] %v9_v1 }

</bundles_post_ra>
